<compile_context>
chip_gen: v6e
topology: v6e:2x2x1
jax: 0.10.0
libtpu: 0.0.40
codegen_flags: <defaults>
</compile_context>

<pallas_src>
import functools

import jax
import jax.numpy as jnp
from jax.experimental import pallas as pl
from jax.experimental.pallas import tpu as pltpu

GAMMA = 2.0   # statically 2 -> explicit square in the kernel (no lax.pow hazard)
ALPHA = 0.25


def _focal_loss_kernel(logits_ref, target_ref, out_ref, *, n_total, alpha):
    """One (TN, C) batch tile per grid step; writes this tile's partial loss sum."""
    i = pl.program_id(0)

    logits = logits_ref[...].astype(jnp.float32)              # (TN, C)
    tn, c = logits.shape
    tgt_col = target_ref[:, 0:1]                               # (TN, 1) int32

    # Numerically stable log-sum-exp.
    m = jnp.max(logits, axis=-1, keepdims=True)                # (TN, 1)
    e = jnp.exp(logits - m)                                     # (TN, C)  (EUP)
    lse = jnp.log(jnp.sum(e, axis=-1, keepdims=True)) + m      # (TN, 1)

    # Target-class logit via one-hot masked reduce (no dynamic gather on TPU).
    cls_ids = jax.lax.broadcasted_iota(jnp.int32, (tn, c), 1)
    onehot = cls_ids == tgt_col
    logit_t = jnp.sum(jnp.where(onehot, logits, 0.0), axis=-1, keepdims=True)

    # CE = logsumexp - logit_t; clamp tiny negative round-off to 0.
    ce = jnp.maximum(lse - logit_t, 0.0)                        # (TN, 1)
    pt = jnp.exp(-ce)                                           # exact PyTorch pt
    omp = 1.0 - pt
    loss = omp * omp * ce * jnp.float32(alpha)                  # gamma==2 -> square

    # Mask padded rows of a ragged last tile (select discards any garbage/NaN).
    row_id = i * tn + jax.lax.broadcasted_iota(jnp.int32, (tn, 1), 0)
    loss = jnp.where(row_id < n_total, loss, 0.0)

    out_ref[0] = jnp.sum(loss, axis=0, keepdims=True)           # this tile's partial


def _tpu_vmem_bytes():
    """Physical VMEM per core; conservative fallback if the query is unavailable."""
    try:
        info = pltpu.get_tpu_info()
        vmem = getattr(info, "vmem_capacity_bytes", None)
        if vmem:
            return int(vmem)
    except Exception:
        pass
    return 64 * 1024 * 1024   # v7x-sized fallback: safe on every generation


def _pick_block_rows(c, itemsize, budget_bytes):
    """Largest batch tile (rows) whose working set fits the VMEM budget.

    Conservative per-row VMEM cost model:
      2 x logits tile (double buffered)                : 2 * c * itemsize
      2 x target tile, 128-lane padded in VMEM         : 2 * 512
      ~4 live (TN, C) f32 intermediates (sub/exp/mask) : 4 * c * 4
      ~8 (TN, 1) row temps, 128-lane padded            : 8 * 512
    """
    per_row = 2 * c * itemsize + 2 * 512 + 4 * c * 4 + 8 * 512
    rows = budget_bytes // per_row
    align = 8 if itemsize >= 4 else (16 if itemsize == 2 else 32)
    rows = (rows // align) * align
    return int(max(align, min(16384, rows)))


def focal_loss(logits, targets, *, block_rows=None):
    """logits: (N, C) float; targets: (N,) int class indices. Returns scalar f32."""
    n, c = logits.shape
    itemsize = jnp.dtype(logits.dtype).itemsize

    # Generation-aware VMEM budget: ~3/4 of 64 MiB parts (v7x), 64 MiB of 128 MiB
    # parts (v5e/v6e) -- well above v5e's 16 MiB scoped default.
    vmem_bytes = _tpu_vmem_bytes()
    usable = 64 * 1024 * 1024 if vmem_bytes >= 128 * 1024 * 1024 else (3 * vmem_bytes) // 4

    if block_rows is None:
        tn = _pick_block_rows(c, itemsize, int(usable * 0.85))
    else:
        tn = int(block_rows)
    tn = min(tn, n)
    if tn < n:
        tn = max(8, (tn // 8) * 8)          # sublane-aligned partial tiles
    num_blocks = pl.cdiv(n, tn)

    # Targets replicated x8: each row's class id occupies one contiguous 32-byte
    # sublane granule, so the target DMA is granule-aligned rather than a 4-byte
    # strided scatter. HBM cost is 32 B/row (tiny vs. the logits stream).
    tgt = jnp.broadcast_to(targets.astype(jnp.int32).reshape(n, 1), (n, 8))

    per_row = 2 * c * itemsize + 2 * 512 + 4 * c * 4 + 8 * 512
    needed = per_row * tn + (1 << 20)
    vmem_limit = int(min(usable, max(2 * needed, 16 * 1024 * 1024)))

    kernel = functools.partial(_focal_loss_kernel, n_total=n, alpha=ALPHA)

    partials = pl.pallas_call(
        kernel,
        out_shape=jax.ShapeDtypeStruct((num_blocks, 1, 1), jnp.float32),
        grid_spec=pltpu.PrefetchScalarGridSpec(
            num_scalar_prefetch=0,
            grid=(num_blocks,),
            in_specs=[
                pl.BlockSpec((tn, c), lambda i: (i, 0)),
                pl.BlockSpec((tn, 8), lambda i: (i, 0)),
            ],
            out_specs=pl.BlockSpec((1, 1, 1), lambda i: (i, 0, 0)),
        ),
        compiler_params=pltpu.CompilerParams(
            # Batch tiles are independent partial sums -> parallel (megacore on v7x).
            dimension_semantics=("parallel",),
            vmem_limit_bytes=vmem_limit,
        ),
        cost_estimate=pl.CostEstimate(
            flops=8 * n * c,
            transcendentals=n * c + 2 * n,
            bytes_accessed=n * c * itemsize + n * 32 + num_blocks * 4,
        ),
    )(logits, tgt)

    # Tiny final reduction (num_blocks scalars) + mean in plain JAX.
    return jnp.sum(partials) / jnp.float32(n)


def _focal_loss_ref(logits, targets):
    """Pure-JAX reference for sanity checking (matches the PyTorch formula)."""
    logits = logits.astype(jnp.float32)
    lse = jax.nn.logsumexp(logits, axis=-1)
    logit_t = jnp.take_along_axis(
        logits, targets[:, None].astype(jnp.int32), axis=-1)[:, 0]
    ce = lse - logit_t
    pt = jnp.exp(-ce)
    loss = ((1.0 - pt) ** GAMMA) * ce * ALPHA
    return jnp.mean(loss)


if __name__ == "__main__":
    key = jax.random.PRNGKey(0)
    k1, k2 = jax.random.split(key)
    N, C = 20, 128  # small classification problem: 20 samples, 128 classes
    logits = jax.random.normal(k1, (N, C), dtype=jnp.float32)
    targets = jax.random.randint(k2, (N,), 0, C, dtype=jnp.int32)

    # Tiled path: 3 tiles, last one ragged -> exercises mask + partial-sum output.
    out_tiled = jax.block_until_ready(focal_loss(logits, targets, block_rows=8))
    # Auto-tiled path (single full-batch tile at these small shapes).
    out_auto = jax.block_until_ready(focal_loss(logits, targets))

    ref = _focal_loss_ref(logits, targets)
    assert jnp.allclose(out_tiled, ref, rtol=1e-4, atol=1e-6), (out_tiled, ref)
    assert jnp.allclose(out_auto, ref, rtol=1e-4, atol=1e-6), (out_auto, ref)
    print("KERNEL_OK")
</pallas_src>

<mosaic_0001>
module attributes {stable_mosaic.version = 11 : i64} {
  func.func @_focal_loss_kernel(%arg0: i32, %arg1: memref<8x128xf32, #tpu.memory_space<vmem>>, %arg2: memref<8x8xi32, #tpu.memory_space<vmem>>, %arg3: memref<1x1x1xf32, #tpu.memory_space<vmem>>) attributes {dimension_semantics = [#tpu.dimension_semantics<parallel>], iteration_bounds = array<i64: 3>, scalar_prefetch = 0 : i64, scratch_operands = 0 : i64, tpu.core_type = #tpu.core_type<tc>, window_params = [{transform_indices = @transform_0, window_bounds = array<i64: 8, 128>}, {transform_indices = @transform_1, window_bounds = array<i64: 8, 8>}, {transform_indices = @transform_2, window_bounds = array<i64: 1, 1, 1>}]} {
    %c0 = arith.constant 0 : index
    %c0_0 = arith.constant 0 : index
    %0 = vector.load %arg1[%c0, %c0_0] : memref<8x128xf32, #tpu.memory_space<vmem>>, vector<8x128xf32>
    %c0_1 = arith.constant 0 : index
    %c0_2 = arith.constant 0 : index
    %1 = vector.load %arg2[%c0_1, %c0_2] : memref<8x8xi32, #tpu.memory_space<vmem>>, vector<8x1xi32>
    %cst = arith.constant dense<0xFF800000> : vector<8xf32>
    %2 = vector.multi_reduction <maximumf>, %0, %cst [1] : vector<8x128xf32> to vector<8xf32>
    %3 = vector.shape_cast %2 : vector<8xf32> to vector<8x1xf32>
    %4 = vector.broadcast %3 : vector<8x1xf32> to vector<8x128xf32>
    %5 = arith.subf %0, %4 : vector<8x128xf32>
    %6 = math.exp %5 : vector<8x128xf32>
    %cst_3 = arith.constant dense<0.000000e+00> : vector<8xf32>
    %7 = vector.multi_reduction <add>, %6, %cst_3 [1] : vector<8x128xf32> to vector<8xf32>
    %8 = vector.shape_cast %7 : vector<8xf32> to vector<8x1xf32>
    %9 = math.log %8 : vector<8x1xf32>
    %10 = arith.addf %9, %3 : vector<8x1xf32>
    %11 = tpu.iota {dimensions = array<i32: 1>} : vector<8x128xi32>
    %12 = vector.broadcast %1 : vector<8x1xi32> to vector<8x128xi32>
    %13 = arith.cmpi eq, %11, %12 : vector<8x128xi32>
    %cst_4 = arith.constant 0.000000e+00 : f32
    %14 = vector.broadcast %cst_4 : f32 to vector<8x128xf32>
    %15 = arith.select %13, %0, %14 : vector<8x128xi1>, vector<8x128xf32>
    %cst_5 = arith.constant dense<0.000000e+00> : vector<8xf32>
    %16 = vector.multi_reduction <add>, %15, %cst_5 [1] : vector<8x128xf32> to vector<8xf32>
    %17 = vector.shape_cast %16 : vector<8xf32> to vector<8x1xf32>
    %18 = arith.subf %10, %17 : vector<8x1xf32>
    %cst_6 = arith.constant 0.000000e+00 : f32
    %19 = vector.broadcast %cst_6 : f32 to vector<8x1xf32>
    %20 = arith.maximumf %18, %19 : vector<8x1xf32>
    %cst_7 = arith.constant 0.000000e+00 : f32
    %21 = vector.broadcast %cst_7 : f32 to vector<8x1xf32>
    %22 = arith.subf %21, %20 : vector<8x1xf32>
    %23 = math.exp %22 : vector<8x1xf32>
    %cst_8 = arith.constant 1.000000e+00 : f32
    %24 = vector.broadcast %cst_8 : f32 to vector<8x1xf32>
    %25 = arith.subf %24, %23 : vector<8x1xf32>
    %26 = arith.mulf %25, %25 : vector<8x1xf32>
    %27 = arith.mulf %26, %20 : vector<8x1xf32>
    %cst_9 = arith.constant 2.500000e-01 : f32
    %28 = vector.broadcast %cst_9 : f32 to vector<8x1xf32>
    %29 = arith.mulf %27, %28 : vector<8x1xf32>
    %c8_i32 = arith.constant 8 : i32
    %30 = arith.muli %arg0, %c8_i32 : i32
    %31 = tpu.iota {dimensions = array<i32: 0>} : vector<8x1xi32>
    %32 = vector.broadcast %30 : i32 to vector<8x1xi32>
    %33 = arith.addi %32, %31 : vector<8x1xi32>
    %c20_i32 = arith.constant 20 : i32
    %34 = vector.broadcast %c20_i32 : i32 to vector<8x1xi32>
    %35 = arith.cmpi slt, %33, %34 : vector<8x1xi32>
    %cst_10 = arith.constant 0.000000e+00 : f32
    %36 = vector.broadcast %cst_10 : f32 to vector<8x1xf32>
    %37 = arith.select %35, %29, %36 : vector<8x1xi1>, vector<8x1xf32>
    %cst_11 = arith.constant dense<0.000000e+00> : vector<1xf32>
    %38 = vector.multi_reduction <add>, %37, %cst_11 [0] : vector<8x1xf32> to vector<1xf32>
    %39 = vector.shape_cast %38 : vector<1xf32> to vector<1x1xf32>
    %c0_12 = arith.constant 0 : index
    %c0_13 = arith.constant 0 : index
    %c0_14 = arith.constant 0 : index
    %40 = vector.load %arg3[%c0_12, %c0_13, %c0_14] : memref<1x1x1xf32, #tpu.memory_space<vmem>>, vector<1x1x1xf32>
    %41 = vector.shape_cast %40 : vector<1x1x1xf32> to vector<1x1xf32>
    %42 = vector.shape_cast %39 : vector<1x1xf32> to vector<1x1x1xf32>
    tpu.vector_store %arg3[%c0_12, %c0_13, %c0_14], %42 {strides = array<i32>} : memref<1x1x1xf32, #tpu.memory_space<vmem>>, vector<1x1x1xf32>,
    return
  }
  func.func @transform_0(%arg0: i32) -> (i32, i32) {
    %c0_i32 = arith.constant 0 : i32
    %c0_i32_0 = arith.constant 0 : i32
    return %arg0, %c0_i32 : i32, i32
  }
  func.func @transform_1(%arg0: i32) -> (i32, i32) {
    %c0_i32 = arith.constant 0 : i32
    %c0_i32_0 = arith.constant 0 : i32
    return %arg0, %c0_i32 : i32, i32
  }
  func.func @transform_2(%arg0: i32) -> (i32, i32, i32) {
    %c0_i32 = arith.constant 0 : i32
    %c0_i32_0 = arith.constant 0 : i32
    %c0_i32_1 = arith.constant 0 : i32
    return %arg0, %c0_i32, %c0_i32_0 : i32, i32, i32
  }
}

</mosaic_0001>

<bundles_post_ra>
// kernel: tpu_custom_call.1
= control target key start
LH: loop header
LB: loop body
LE: loop exit
PB: predicated region body
PF: predicated region fallthrough
CT: control target
= control target key end

     0   :  { %s308_s9 = smov 0   ;;  %s337_s0 = inlined_call_operand.vmem [shape: f32[20,128], index: 0, kind: input, shape index: {}]   ;;  %s338_s1 = inlined_call_operand.vmem [shape: s32[20,8], index: 1, kind: input, shape index: {}]   ;;  %s339_s2 = inlined_call_operand.vmem [shape: f32[3,1,1], index: 2, kind: output, shape index: {}]  }
   0x1 LB: > { %s314_s10 = sadd.s32 4294967295, %s290_s9   ;;  %p262_p0 = scmp.ge.s32.totalorder %s290_s9, 1  ;;  %s290_s9 = sphi %s308_s9, %s12_s9  }
   0x2   : > { %p120_p1 = scmp.lt.s32.totalorder %s290_s9, 4 }
   0x4   : > { %p121_p2 = pnand %p262_p0, %p120_p1 }
   0x5   : > { %p143_p3 = scmp.lt.s32.totalorder (!%p121_p2), %s314_s10, 2  ;;  %s265_s19 = sshll.u32 (!%p121_p2), %s314_s10, 3 }
   0x6   : > { %124 = sbr.rel (%p121_p2) target bundleno = 372 (0x174), region = 28 }
   0xb   : > { %v292_v0 = vmov 0   ;;  %s320_s11 = scalar_select %p143_p3, %s314_s10, 2  ;;  %v166_v6 = vlaneseq  ;;  %v187_v21 = vstv %s265_s19  ;;  %vm197_vm2 = vcmask 0  }
   0xc   : > { %277 = vset.pattern.permute.xlu0 %v292_v0 }
   0xd   : > { %s263_s12 = sshll.u32 %s320_s11, 3  ;;  %v167_v7 = vand.u32 127, %v166_v6  ;;  %v186_v20 = vshrl.u32 %v166_v6, 7  ;;  %s153_s22 = scalar_lea.vmem %s339_s2, %s320_s11 }
   0xe   : > { %s146_s15 = scalar_lea.vmem %s337_s0, %s263_s12  ;;  %s150_s18 = scalar_lea.vmem %s338_s1, %s263_s12 }
   0xf   : > { %v154_v1 = vld [vmem:[%s146_s15] sm:$0xff]  ;;  %v188_v24 = vadd.s32 %v187_v21, %v186_v20 }
  0x10   : > { %156 = vmax.xlane.f32.xlu0 %v154_v1  ;;  %v155_v2 = vld [vmem:[%s150_s18] sm:$0xff] }
  0x11   : > { %vm189_vm1 = vcmp.lt.s32.totalorder %v188_v24, 20 }
  0x26   : > { %169 = vperm.xlu0 %277, %v155_v2  }
  0x99   : > { %v157_v3 = vpop.xlane.xlu0 %156 }
  0x9a   : > { %v158_v4 = vsub.f32 %v154_v1, %v157_v3 }
  0x9c   : > { %v159_v5 = vmul.f32 1.442695, %v158_v4 }
  0x9e   : > { %278 = vpow2.f32 %v159_v5 }
  0xa1   : > { %v170_v8 = vpop.permute.xlu0 %169 }
  0xa2   : > { %vm171_vm0 = vcmp.eq.s32.totalorder %v167_v7, %v170_v8 }
  0xa3   : > { %v172_v10 = vsel %vm171_vm0, %v154_v1, 0.0 }
  0xab   : > { %v279_v9 = vpop.eup %278 }
  0xac   : > { %161 = vadd.xlane.f32.xlu1 %v279_v9 }
  0xb0   : > { %173 = vadd.xlane.f32.xlu1 %v172_v10 }
 0x135   : > { %v162_v11 = vpop.xlane.xlu1 %161 }
 0x136   : > { %280 = vlog2.f32 %v162_v11 }
 0x139   : > { %v174_v14 = vpop.xlane.xlu1 %173 }
 0x143   : > { %v281_v12 = vpop.eup %280 }
 0x144   : > { %v164_v13 = vmul.f32 0.6931472, %v281_v12 }
 0x146   : > { %v165_v15 = vadd.f32 %v164_v13, %v157_v3 }
 0x148   : > { %v175_v16 = vsub.f32 %v165_v15, %v174_v14 }
 0x14a   : > { %v176_v17 = vmax.f32 %v175_v16, 0.0 }
 0x14c   : > { %v177_v18 = vsub.f32 0.0, %v176_v17 }
 0x14e   : > { %v178_v19 = vmul.f32 1.442695, %v177_v18 }
 0x150   : > { %282 = vpow2.f32 %v178_v19 }
 0x15d   : > { %v283_v22 = vpop.eup %282 }
 0x15e   : > { %v180_v23 = vsub.f32 1.0, %v283_v22 }
 0x160   : > { %v181_v25 = vmul.f32 %v180_v23, %v180_v23 }
 0x162   : > { %v182_v26 = vmul.f32 %v181_v25, %v176_v17 }
 0x164   : > { %v183_v27 = vmul.f32 0.25, %v182_v26 }
 0x166   : > { %v190_v28 = vsel %vm189_vm1, %v183_v27, 0.0 }
 0x167   : > { %v191_v29 = vrot.slane %v190_v28, 4 }
 0x169   : > { %v192_v30 = vadd.f32 %v191_v29, %v190_v28 }
 0x16b   : > { %v193_v31 = vrot.slane %v192_v30, 2 }
 0x16d   : > { %v194_v32 = vadd.f32 %v193_v31, %v192_v30 }
 0x16f   : > { %v195_v33 = vrot.slane %v194_v32, 1 }
 0x171   : > { %v196_v34 = vadd.f32 %v195_v33, %v194_v32 }
 0x173   : > { %198 = vst.msk [vmem:[%s153_s22] sm:$0x1] %vm197_vm2, %v196_v34 }
 0x174 PF: > { %s12_s9 = sadd.s32 1, %s290_s9  }
 0x175   : > { %p9_p4 = scmp.ge.s32.totalorder %s12_s9, 5  }
 0x177   :  { %11 = sbr.rel (!%p9_p4) target bundleno = 1 (0x1), region = 61 }

</bundles_post_ra>
